<compile_context>
chip_gen: v7x
topology: tpu7x:2x2x1
jax: 0.10.0
libtpu: 0.0.40
codegen_flags: <defaults>
</compile_context>

<pallas_src>
import jax
import jax.numpy as jnp
from jax.experimental import pallas as pl
from jax.experimental.pallas import tpu as pltpu


# --------------------------------------------------------------------------- #
# Kernels
# --------------------------------------------------------------------------- #
def _softmax_h_kernel(p_ref, a_ref):
    """Numerically stable softmax over axis=-2 (H) of a (c_tile, H, W) block."""
    p = p_ref[...].astype(jnp.float32)
    m = jnp.max(p, axis=-2, keepdims=True)            # (c_tile, 1, W)
    e = jnp.exp(p - m)                                 # (c_tile, H, W)
    denom = jnp.sum(e, axis=-2, keepdims=True)         # (c_tile, 1, W)
    a_ref[...] = (e * pl.reciprocal(denom, approx=False)).astype(a_ref.dtype)


def _bcast_mul_kernel(attn_ref, x_ref, o_ref):
    # attn_ref: (1, tf); x_ref/o_ref: (tb, tf).  Pure VPU broadcast multiply in
    # the I/O dtype (no upcast -> HBM traffic stays at native byte width).
    o_ref[...] = (x_ref[...] * attn_ref[...]).astype(o_ref.dtype)


# --------------------------------------------------------------------------- #
# Tiling helpers
# --------------------------------------------------------------------------- #
def _round_up(x, m):
    return ((x + m - 1) // m) * m


def _round_down(x, m):
    return (x // m) * m


def _sublane_multiple(dtype):
    """Sublane packing multiple: 8 for 4-byte, 16 for 2-byte, 32 for 1-byte."""
    return {4: 8, 2: 16, 1: 32}.get(jnp.dtype(dtype).itemsize, 8)


def _choose_tiles(B, F, dtype, block_budget_bytes=4 << 20):
    """Pick (tb, tf) for the (B, F) multiply under a per-block byte budget.

    tf (lane axis) is grown first and kept a multiple of 128 (or the full
    extent if F < 128); tb is a multiple of the dtype's sublane group (or the
    full extent if B is smaller than one group).  Neither choice can exceed
    the byte budget except by the minimal legal tile.
    """
    item = jnp.dtype(dtype).itemsize
    sub = _sublane_multiple(dtype)

    # Lane tile: largest multiple of 128 such that one sublane-group row slab
    # (sub, tf) stays within budget; never larger than F rounded down to 128.
    if F < 128:
        tf = F                                             # full-extent lane dim
    else:
        tf_cap = max(128, _round_down(block_budget_bytes // (sub * item), 128))
        tf = min(_round_down(F, 128), tf_cap)

    # Batch tile: fill the remaining budget, in whole sublane groups.
    if B < sub:
        tb = B                                             # full-extent sublane dim
    else:
        tb_cap = max(sub, _round_down(block_budget_bytes // (tf * item), sub))
        tb = min(_round_down(B, sub), tb_cap)

    return tb, tf


def _softmax_c_tile(C, H, W, budget_bytes=2 << 20):
    """Channels per softmax block so the f32 working set stays ~<= budget."""
    per_c = max(1, H * W * 4)
    return max(1, min(C, budget_bytes // per_c))


# --------------------------------------------------------------------------- #
# Wrapper
# --------------------------------------------------------------------------- #
def attention2d(x, attention_param):
    """x: (B, C, H, W); attention_param: (C, H, W). Returns (B, C, H, W)."""
    B, C, H, W = x.shape
    assert attention_param.shape == (C, H, W)
    F = C * H * W
    item = jnp.dtype(x.dtype).itemsize

    # ---- 1) Batch-invariant softmax over H (dim=-2), one shot, gridded on C
    #         so large params never need to fit VMEM in a single block.
    ct = _softmax_c_tile(C, H, W)
    attn = pl.pallas_call(
        _softmax_h_kernel,
        out_shape=jax.ShapeDtypeStruct((C, H, W), x.dtype),
        grid_spec=pltpu.PrefetchScalarGridSpec(
            num_scalar_prefetch=0,
            grid=(pl.cdiv(C, ct),),
            in_specs=[pl.BlockSpec((ct, H, W), lambda i: (i, 0, 0))],
            out_specs=pl.BlockSpec((ct, H, W), lambda i: (i, 0, 0)),
        ),
        compiler_params=pltpu.CompilerParams(
            dimension_semantics=("parallel",),
        ),
    )(attention_param)

    # ---- 2) Lane-dense flattened views for the broadcast multiply.
    x_flat = x.reshape(B, F)          # free for contiguous NCHW input
    attn_flat = attn.reshape(1, F)

    tb, tf = _choose_tiles(B, F, x.dtype)
    nf = pl.cdiv(F, tf)
    nb = pl.cdiv(B, tb)

    # Explicit VMEM budget: double-buffered x-in + out + attn blocks, plus
    # headroom, clamped so we never exceed the v7x 64 MiB physical budget.
    blk_x = tb * tf * item
    blk_a = tf * item
    needed = 2 * (2 * blk_x + blk_a)
    vmem_limit = int(min(max(needed + (8 << 20), 32 << 20), 48 << 20))

    out_flat = pl.pallas_call(
        _bcast_mul_kernel,
        out_shape=jax.ShapeDtypeStruct((B, F), x.dtype),
        grid_spec=pltpu.PrefetchScalarGridSpec(
            num_scalar_prefetch=0,
            # Batch innermost: the attn tile's block index depends only on the
            # feature-tile index, so it stays resident across the inner loop.
            grid=(nf, nb),
            in_specs=[
                pl.BlockSpec((1, tf), lambda f, b: (0, f)),    # attn (resident over b)
                pl.BlockSpec((tb, tf), lambda f, b: (b, f)),   # x
            ],
            out_specs=pl.BlockSpec((tb, tf), lambda f, b: (b, f)),
        ),
        compiler_params=pltpu.CompilerParams(
            dimension_semantics=("parallel", "parallel"),
            vmem_limit_bytes=vmem_limit,
        ),
    )(attn_flat, x_flat)

    return out_flat.reshape(B, C, H, W)


def attention2d_ref(x, attention_param):
    """Pure-JAX reference mirroring the PyTorch forward."""
    attn = jax.nn.softmax(attention_param.astype(jnp.float32), axis=-2)
    return (attn[None, ...] * x.astype(jnp.float32)).astype(x.dtype)


# --------------------------------------------------------------------------- #
# Self-test
# --------------------------------------------------------------------------- #
if __name__ == "__main__":
    # Small shapes consistent with the module: x (B, C, H, W), param (C, H, W)
    B, C, H, W = 2, 4, 16, 16

    key = jax.random.PRNGKey(0)
    k_x, k_p = jax.random.split(key)

    x = jax.random.normal(k_x, (B, C, H, W), dtype=jnp.float32)
    # nn.Parameter(torch.randn(C, H, W)) -> standard normal init
    attention_param = jax.random.normal(k_p, (C, H, W), dtype=jnp.float32)

    # f32 path
    out = jax.block_until_ready(attention2d(x, attention_param))
    ref = attention2d_ref(x, attention_param)
    assert out.shape == (B, C, H, W)
    assert jnp.allclose(out, ref, atol=1e-5, rtol=1e-5), "f32 mismatch vs reference"

    # bf16 path (product computed in bf16 I/O dtype -> looser tolerance)
    x_bf = x.astype(jnp.bfloat16)
    out_bf = jax.block_until_ready(attention2d(x_bf, attention_param))
    ref_bf = attention2d_ref(x_bf, attention_param)
    assert jnp.allclose(out_bf.astype(jnp.float32),
                        ref_bf.astype(jnp.float32),
                        atol=2e-2, rtol=2e-2), "bf16 mismatch vs reference"

    print("KERNEL_OK")
</pallas_src>

<mosaic_0001>
module attributes {stable_mosaic.version = 11 : i64} {
  func.func @_softmax_h_kernel(%arg0: i32, %arg1: memref<4x16x16xf32, #tpu.memory_space<vmem>>, %arg2: memref<4x16x16xf32, #tpu.memory_space<vmem>>) attributes {dimension_semantics = [#tpu.dimension_semantics<parallel>], iteration_bounds = array<i64: 1>, scalar_prefetch = 0 : i64, scratch_operands = 0 : i64, tpu.core_type = #tpu.core_type<tc>, window_params = [{transform_indices = @transform_0, window_bounds = array<i64: 4, 16, 16>}, {transform_indices = @transform_1, window_bounds = array<i64: 4, 16, 16>}]} {
    %c0 = arith.constant 0 : index
    %c0_0 = arith.constant 0 : index
    %c0_1 = arith.constant 0 : index
    %0 = vector.load %arg1[%c0, %c0_0, %c0_1] : memref<4x16x16xf32, #tpu.memory_space<vmem>>, vector<4x16x16xf32>
    %cst = arith.constant dense<0xFF800000> : vector<4x16xf32>
    %1 = vector.multi_reduction <maximumf>, %0, %cst [1] : vector<4x16x16xf32> to vector<4x16xf32>
    %2 = vector.shape_cast %1 : vector<4x16xf32> to vector<4x1x16xf32>
    %3 = vector.broadcast %2 : vector<4x1x16xf32> to vector<4x16x16xf32>
    %4 = arith.subf %0, %3 : vector<4x16x16xf32>
    %5 = math.exp %4 : vector<4x16x16xf32>
    %cst_2 = arith.constant dense<0.000000e+00> : vector<4x16xf32>
    %6 = vector.multi_reduction <add>, %5, %cst_2 [1] : vector<4x16x16xf32> to vector<4x16xf32>
    %7 = vector.shape_cast %6 : vector<4x16xf32> to vector<4x1x16xf32>
    %8 = tpu.reciprocal %7 : vector<4x1x16xf32> -> vector<4x1x16xf32>
    %9 = vector.broadcast %8 : vector<4x1x16xf32> to vector<4x16x16xf32>
    %10 = arith.mulf %5, %9 : vector<4x16x16xf32>
    %c0_3 = arith.constant 0 : index
    %c0_4 = arith.constant 0 : index
    %c0_5 = arith.constant 0 : index
    %11 = vector.load %arg2[%c0_3, %c0_4, %c0_5] : memref<4x16x16xf32, #tpu.memory_space<vmem>>, vector<4x16x16xf32>
    tpu.vector_store %arg2[%c0_3, %c0_4, %c0_5], %10 {strides = array<i32>} : memref<4x16x16xf32, #tpu.memory_space<vmem>>, vector<4x16x16xf32>,
    return
  }
  func.func @transform_0(%arg0: i32) -> (i32, i32, i32) {
    %c0_i32 = arith.constant 0 : i32
    %c0_i32_0 = arith.constant 0 : i32
    %c0_i32_1 = arith.constant 0 : i32
    return %arg0, %c0_i32, %c0_i32_0 : i32, i32, i32
  }
  func.func @transform_1(%arg0: i32) -> (i32, i32, i32) {
    %c0_i32 = arith.constant 0 : i32
    %c0_i32_0 = arith.constant 0 : i32
    %c0_i32_1 = arith.constant 0 : i32
    return %arg0, %c0_i32, %c0_i32_0 : i32, i32, i32
  }
}

</mosaic_0001>

<bundles_post_ra>
// kernel: tpu_custom_call.1
= control target key start
LH: loop header
LB: loop body
LE: loop exit
PB: predicated region body
PF: predicated region fallthrough
CT: control target
= control target key end

     0   :  { %6 = vsyncpa [#allocation3], 0  ;;  %s309_s0 = inlined_call_operand.hbm [shape: f32[4,16,16], index: 0, kind: input, shape index: {}]   ;;  %s310_s1 = inlined_call_operand.hbm [shape: f32[4,16,16], index: 1, kind: output, shape index: {}]  }
   0x1   :  { %7 = vsyncpa [#allocation4], 0  ;;  %s241_s6 = smov [#allocation2]   ;;  %s193_s10 = scalar_lea.hbm %s309_s0, 1024 }
   0x2   :  { %s13_s7 = sshll.u32 %s241_s6, 4  ;;  %p194_p0 = scmp.ne.s32.totalorder %s309_s0, %s193_s10  ;;  %s14_s7 = int_to_ptr.vmem [resolvable:$true] %s13_s7 }
   0x3   :  { %p197_p1 = scmp.lt.u32.totalorder %s193_s10, %s309_s0 }
   0x5   :  { %p199_p2 = pnand %p197_p1, %p194_p0 }
   0x7   :  { %202 = shalt.err (!%p199_p2)
}
   0x8   :  { %s203_s15 = scalar_lea.vmem %s14_s7, 1024  ;;  %p208_p4 = scmp.lt.s32.totalorder %s14_s7, %s14_s7 }
   0x9   :  { %p204_p3 = scmp.ne.s32.totalorder %s14_s7, %s203_s15  ;;  %p209_p5 = scmp.lt.s32.totalorder %s203_s15, %s203_s15 }
   0xb   :  { %p210_p6 = por %p209_p5, %p208_p4 }
   0xd   :  { %p211_p7 = pnand %p210_p6, %p204_p3 }
   0xf   :  { %214 = shalt.err (!%p211_p7)
}
  0x10   :  { %s242_s16 = smov 128   ;;  %s243_s17 = smov 8  }
  0x11   :  { %19 = dma.hbm_to_vmem [thread:$0]  %s309_s0, 1024, %s14_s7, [#allocation3], %s242_s16, %s242_s16, %s243_s17  }
  0x12   :  { %237 = dma.done.wait [#allocation3], 1024  }
  0x13   :  { %238 = vsyncadd [#allocation3], 4294966272  ;;  %vm31_vm0 = vcmask 130048   ;;  %v23_v0 = vld [vmem:[#allocation2] sm:$0xff]  ;;  %v24_v1 = vld [vmem:[#allocation2 + $0x8] sm:$0xff]  ;;  %s244_s0 = smov [#allocation5]  }
  0x14   :  { %v25_v2 = vld [vmem:[#allocation2 + $0x10] sm:$0xff]  ;;  %v32_v3 = vsel %vm31_vm0, %v23_v0, -inf  ;;  %v33_v4 = vsel %vm31_vm0, %v24_v1, -inf  ;;  %v26_v5 = vld [vmem:[#allocation2 + $0x18] sm:$0xff]  ;;  %v27_v7 = vld [vmem:[#allocation2 + $0x20] sm:$0xff]  ;;  %s153_s20 = sshll.u32 %s244_s0, 4  ;;  %s154_s20 = int_to_ptr.vmem [resolvable:$true] %s153_s20 }
  0x15   :  { %v41_v6 = vsel %vm31_vm0, %v25_v2, -inf  ;;  %v28_v8 = vld [vmem:[#allocation2 + $0x28] sm:$0xff]  ;;  %v34_v9 = vmax.f32 %v32_v3, %v33_v4  ;;  %v42_v10 = vsel %vm31_vm0, %v26_v5, -inf  ;;  %v50_v11 = vsel %vm31_vm0, %v27_v7, -inf  ;;  %v29_v13 = vld [vmem:[#allocation2 + $0x30] sm:$0xff]  ;;  %v30_v14 = vld [vmem:[#allocation2 + $0x38] sm:$0xff]  ;;  %p220_p9 = scmp.lt.s32.totalorder %s154_s20, %s154_s20 }
  0x16   :  { %v51_v12 = vsel %vm31_vm0, %v28_v8, -inf  ;;  %v43_v15 = vmax.f32 %v41_v6, %v42_v10  ;;  %v59_v17 = vsel %vm31_vm0, %v29_v13, -inf  ;;  %v60_v18 = vsel %vm31_vm0, %v30_v14, -inf  ;;  %s215_s21 = scalar_lea.vmem %s154_s20, 1024 }
  0x17   :  { %v52_v16 = vmax.f32 %v50_v11, %v51_v12  ;;  %v35_v19 = vrot.slane %v34_v9, 4  ;;  %v61_v20 = vmax.f32 %v59_v17, %v60_v18  ;;  %p216_p8 = scmp.ne.s32.totalorder %s154_s20, %s215_s21  ;;  %p221_p10 = scmp.lt.s32.totalorder %s215_s21, %s215_s21 }
  0x18   :  { %v44_v21 = vrot.slane %v43_v15, 4 }
  0x19   :  { %v53_v22 = vrot.slane %v52_v16, 4  ;;  %v36_v23 = vmax.f32 %v34_v9, %v35_v19  ;;  %v62_v24 = vrot.slane %v61_v20, 4  ;;  %p222_p11 = por %p221_p10, %p220_p9 }
  0x1a   :  { %v45_v25 = vmax.f32 %v43_v15, %v44_v21 }
  0x1b   :  { %v54_v26 = vmax.f32 %v52_v16, %v53_v22  ;;  %v37_v27 = vrot.slane %v36_v23, 2  ;;  %v63_v28 = vmax.f32 %v61_v20, %v62_v24  ;;  %p223_p12 = pnand %p222_p11, %p216_p8 }
  0x1c   :  { %v46_v29 = vrot.slane %v45_v25, 2 }
  0x1d   :  { %v55_v30 = vrot.slane %v54_v26, 2  ;;  %v38_v31 = vmax.f32 %v36_v23, %v37_v27  ;;  %v64_v32 = vrot.slane %v63_v28, 2 }
  0x1e   :  { %v47_v33 = vmax.f32 %v45_v25, %v46_v29 }
  0x1f   :  { %v56_v34 = vmax.f32 %v54_v26, %v55_v30  ;;  %v39_v35 = vrot.slane %v38_v31, 1  ;;  %v65_v36 = vmax.f32 %v63_v28, %v64_v32 }
  0x20   :  { %v48_v37 = vrot.slane %v47_v33, 1 }
  0x21   :  { %v57_v38 = vrot.slane %v56_v34, 1  ;;  %v40_v39 = vmax.f32 %v38_v31, %v39_v35  ;;  %v66_v40 = vrot.slane %v65_v36, 1 }
  0x22   :  { %v49_v41 = vmax.f32 %v47_v33, %v48_v37 }
  0x23   :  { %v58_v42 = vmax.f32 %v56_v34, %v57_v38  ;;  %v68_v43 = vsub.f32 %v23_v0, %v40_v39  ;;  %v69_v44 = vsub.f32 %v24_v1, %v40_v39  ;;  %v67_v45 = vmax.f32 %v65_v36, %v66_v40 }
  0x24   :  { %v70_v46 = vsub.f32 %v25_v2, %v49_v41  ;;  %v71_v47 = vsub.f32 %v26_v5, %v49_v41 }
  0x25   :  { %v72_v48 = vsub.f32 %v27_v7, %v58_v42  ;;  %v73_v49 = vsub.f32 %v28_v8, %v58_v42  ;;  %v76_v50 = vmul.f32 1.442695, %v68_v43  ;;  %v78_v51 = vmul.f32 1.442695, %v69_v44 }
  0x26   :  { %v74_v52 = vsub.f32 %v29_v13, %v67_v45  ;;  %v80_v53 = vmul.f32 1.442695, %v70_v46  ;;  %v82_v54 = vmul.f32 1.442695, %v71_v47  ;;  %v75_v55 = vsub.f32 %v30_v14, %v67_v45 }
  0x27   :  { %169 = vpow2.f32 %v76_v50  ;;  %v84_v56 = vmul.f32 1.442695, %v72_v48  ;;  %v86_v57 = vmul.f32 1.442695, %v73_v49 }
  0x28   :  { %171 = vpow2.f32 %v78_v51  ;;  %v88_v58 = vmul.f32 1.442695, %v74_v52  ;;  %v90_v59 = vmul.f32 1.442695, %v75_v55 }
  0x29   :  { %173 = vpow2.f32 %v80_v53 }
  0x2a   :  { %175 = vpow2.f32 %v82_v54 }
  0x2b   :  { %177 = vpow2.f32 %v84_v56 }
  0x2c   :  { %179 = vpow2.f32 %v86_v57 }
  0x2d   :  { %181 = vpow2.f32 %v88_v58 }
  0x2e   :  { %183 = vpow2.f32 %v90_v59 }
  0x31   :  { %v170_v60 = vpop.eup %169 }
  0x32   :  { %v172_v61 = vpop.eup %171  ;;  %v92_v62 = vsel %vm31_vm0, %v170_v60, 0.0 }
  0x33   :  { %v174_v63 = vpop.eup %173  ;;  %v93_v0 = vsel %vm31_vm0, %v172_v61, 0.0 }
  0x34   :  { %v176_v1 = vpop.eup %175  ;;  %v94_v2 = vadd.f32 %v93_v0, %v92_v62  ;;  %v101_v3 = vsel %vm31_vm0, %v174_v63, 0.0 }
  0x35   :  { %v178_v4 = vpop.eup %177  ;;  %v102_v5 = vsel %vm31_vm0, %v176_v1, 0.0 }
  0x36   :  { %v180_v6 = vpop.eup %179  ;;  %v95_v7 = vrot.slane %v94_v2, 4  ;;  %v103_v8 = vadd.f32 %v102_v5, %v101_v3  ;;  %v110_v9 = vsel %vm31_vm0, %v178_v4, 0.0 }
  0x37   :  { %v182_v10 = vpop.eup %181  ;;  %v111_v11 = vsel %vm31_vm0, %v180_v6, 0.0 }
  0x38   :  { %v184_v12 = vpop.eup %183  ;;  %v96_v13 = vadd.f32 %v95_v7, %v94_v2  ;;  %v104_v14 = vrot.slane %v103_v8, 4  ;;  %v112_v15 = vadd.f32 %v111_v11, %v110_v9  ;;  %v119_v16 = vsel %vm31_vm0, %v182_v10, 0.0 }
  0x39   :  { %v120_v17 = vsel %vm31_vm0, %v184_v12, 0.0 }
  0x3a   :  { %v97_v18 = vrot.slane %v96_v13, 2  ;;  %v105_v19 = vadd.f32 %v104_v14, %v103_v8  ;;  %v113_v20 = vrot.slane %v112_v15, 4  ;;  %v121_v21 = vadd.f32 %v120_v17, %v119_v16 }
  0x3c   :  { %v98_v22 = vadd.f32 %v97_v18, %v96_v13  ;;  %v106_v23 = vrot.slane %v105_v19, 2  ;;  %v114_v24 = vadd.f32 %v113_v20, %v112_v15  ;;  %v122_v25 = vrot.slane %v121_v21, 4 }
  0x3e   :  { %v99_v26 = vrot.slane %v98_v22, 1  ;;  %v107_v27 = vadd.f32 %v106_v23, %v105_v19  ;;  %v115_v28 = vrot.slane %v114_v24, 2  ;;  %v123_v29 = vadd.f32 %v122_v25, %v121_v21 }
  0x40   :  { %v100_v30 = vadd.f32 %v99_v26, %v98_v22  ;;  %v108_v31 = vrot.slane %v107_v27, 1  ;;  %v116_v32 = vadd.f32 %v115_v28, %v114_v24  ;;  %v124_v33 = vrot.slane %v123_v29, 2 }
  0x42   :  { %185 = vrcp.f32 %v100_v30  ;;  %v109_v34 = vadd.f32 %v108_v31, %v107_v27  ;;  %v117_v35 = vrot.slane %v116_v32, 1  ;;  %v125_v36 = vadd.f32 %v124_v33, %v123_v29 }
  0x44   :  { %187 = vrcp.f32 %v109_v34  ;;  %v118_v37 = vadd.f32 %v117_v35, %v116_v32  ;;  %v126_v38 = vrot.slane %v125_v36, 1 }
  0x46   :  { %189 = vrcp.f32 %v118_v37  ;;  %v127_v39 = vadd.f32 %v126_v38, %v125_v36 }
  0x48   :  { %191 = vrcp.f32 %v127_v39 }
  0x4c   :  { %v186_v40 = vpop.eup %185 }
  0x4d   :  { %v132_v41 = vmul.f32 %v186_v40, %v170_v60  ;;  %v133_v42 = vmul.f32 %v186_v40, %v172_v61 }
  0x4e   :  { %v188_v43 = vpop.eup %187 }
  0x4f   :  { %140 = vst.msk [vmem:[#allocation5] sm:$0xff] %vm31_vm0, %v132_v41  ;;  %141 = vst.msk [vmem:[#allocation5 + $0x8] sm:$0xff] %vm31_vm0, %v133_v42  ;;  %v134_v44 = vmul.f32 %v188_v43, %v174_v63  ;;  %v135_v45 = vmul.f32 %v188_v43, %v176_v1 }
  0x50   :  { %v190_v46 = vpop.eup %189 }
  0x51   :  { %142 = vst.msk [vmem:[#allocation5 + $0x10] sm:$0xff] %vm31_vm0, %v134_v44  ;;  %143 = vst.msk [vmem:[#allocation5 + $0x18] sm:$0xff] %vm31_vm0, %v135_v45  ;;  %v136_v47 = vmul.f32 %v190_v46, %v178_v4  ;;  %v137_v48 = vmul.f32 %v190_v46, %v180_v6 }
  0x52   :  { %v192_v49 = vpop.eup %191 }
  0x53   :  { %144 = vst.msk [vmem:[#allocation5 + $0x20] sm:$0xff] %vm31_vm0, %v136_v47  ;;  %145 = vst.msk [vmem:[#allocation5 + $0x28] sm:$0xff] %vm31_vm0, %v137_v48  ;;  %v138_v50 = vmul.f32 %v192_v49, %v182_v10  ;;  %v139_v51 = vmul.f32 %v192_v49, %v184_v12 }
  0x55   :  { %146 = vst.msk [vmem:[#allocation5 + $0x30] sm:$0xff] %vm31_vm0, %v138_v50  ;;  %147 = vst.msk [vmem:[#allocation5 + $0x38] sm:$0xff] %vm31_vm0, %v139_v51 }
  0x56   :  { %226 = shalt.err (!%p223_p12)
}
  0x57   :  { %s227_s24 = scalar_lea.hbm %s310_s1, 1024 }
  0x58   :  { %p228_p13 = scmp.ne.s32.totalorder %s310_s1, %s227_s24  ;;  %p231_p0 = scmp.lt.u32.totalorder %s227_s24, %s310_s1 }
  0x5a   :  { %p233_p1 = pnand %p231_p0, %p228_p13 }
  0x5c   :  { %236 = shalt.err (!%p233_p1)
}
  0x5d   :  { %159 = dma.vmem_to_hbm [thread:$0]  %s154_s20, 1024, %s310_s1, [#allocation4], %s242_s16, %s242_s16, %s243_s17  }
  0x5e   :  { %239 = dma.done.wait [#allocation4], 1024  }
  0x5f   :  { %240 = vsyncadd [#allocation4], 4294966272 }
  0x60   :  { %163 = vsyncpa [#allocation3], 1 }
  0x61   :  { %164 = vsyncpa [#allocation4], 1 }

</bundles_post_ra>
